<compile_context>
chip_gen: v6e
topology: v6e:2x2x1
jax: 0.10.0
libtpu: 0.0.40
codegen_flags: <defaults>
</compile_context>

<pallas_src>
import functools

import jax
import jax.numpy as jnp
from jax import lax
from jax.experimental import pallas as pl
from jax.experimental.pallas import tpu as pltpu


def _round_up(x, m):
    return (x + m - 1) // m * m


def _uniform_u32(shape, seed_u32, row_start_u32):
    """Counter-based hash -> uniform uint32 bits.

    Pure function of (seed, global row index, column index), so the dropout
    mask is deterministic and does NOT depend on the row-tile size or on which
    TensorCore executes a tile.  Uses only VPU integer ops (mul/xor/shift), so
    it lowers both under Mosaic and in interpret mode.
    """
    rows = lax.broadcasted_iota(jnp.uint32, shape, 0) + row_start_u32
    cols = lax.broadcasted_iota(jnp.uint32, shape, 1)
    h = (rows * jnp.uint32(0x9E3779B1)
         + cols * jnp.uint32(0x85EBCA77)
         + seed_u32 * jnp.uint32(0xC2B2AE3D))
    # fmix32-style avalanche
    h = h ^ (h >> jnp.uint32(16))
    h = h * jnp.uint32(0x7FEB352D)
    h = h ^ (h >> jnp.uint32(15))
    h = h * jnp.uint32(0x846CA68B)
    h = h ^ (h >> jnp.uint32(16))
    return h


def _sublayer_connection_kernel(seed_ref,             # SMEM scalar prefetch
                                x_ref, gamma_ref, beta_ref, w_ref, b_ref,
                                out_ref,
                                *, dropout_p, eps, training, tm,
                                use_bf16_matmul):
    x = x_ref[...].astype(jnp.float32)                         # (tm, H)
    hdim = x.shape[-1]

    # --- LayerNorm over hidden axis: single fused reduction pass ---
    inv_h = jnp.float32(1.0 / hdim)
    s1 = jnp.sum(x, axis=-1, keepdims=True)
    s2 = jnp.sum(x * x, axis=-1, keepdims=True)
    mean = s1 * inv_h
    var = jnp.maximum(s2 * inv_h - mean * mean, 0.0)           # biased, like torch
    h = (x - mean) * lax.rsqrt(var + eps)
    h = h * gamma_ref[...].astype(jnp.float32) + beta_ref[...].astype(jnp.float32)

    # --- Example sublayer: Linear(H, H) on the MXU (bf16 in, f32 accum) ---
    if use_bf16_matmul:
        s = jnp.dot(h.astype(jnp.bfloat16), w_ref[...],
                    preferred_element_type=jnp.float32)
    else:
        s = jnp.dot(h, w_ref[...].astype(jnp.float32),
                    preferred_element_type=jnp.float32)
    s = s + b_ref[...].astype(jnp.float32)

    # --- Dropout (inverted scaling), deterministic given the seed ---
    if training and dropout_p > 0.0:
        row_start = (pl.program_id(0) * tm).astype(jnp.uint32)
        bits = _uniform_u32(s.shape, seed_ref[0].astype(jnp.uint32), row_start)
        thresh = jnp.uint32(min(int(round(dropout_p * (2.0 ** 32))), 2 ** 32 - 1))
        keep = bits >= thresh
        s = jnp.where(keep, s * jnp.float32(1.0 / (1.0 - dropout_p)),
                      jnp.float32(0.0))

    # --- Residual: reuse the already-loaded x (no second read of x_ref) ---
    out_ref[...] = (x + s).astype(out_ref.dtype)


def sublayer_connection(x, gamma, beta, w, b, seed,
                        *, dropout_p=0.1, eps=1e-5, training=True,
                        tm=512, use_bf16_matmul=True):
    """x: (B, S, H); gamma/beta/b: (H,); w: (H, H); seed: int."""
    B, S, H = x.shape
    R = B * S
    x2 = x.reshape(R, H)

    # Row tile: as large as possible (sublane-aligned), capped by the padded
    # row count.  Pad the tail rows instead of requiring R % tm == 0.
    row_align = 16 if x.dtype == jnp.bfloat16 else 8
    tm = max(row_align, min(_round_up(tm, row_align), _round_up(R, row_align)))
    r_pad = _round_up(R, tm)
    if r_pad != R:
        x2 = jnp.pad(x2, ((0, r_pad - R), (0, 0)))

    gamma2 = gamma.reshape(1, H).astype(jnp.float32)
    beta2 = beta.reshape(1, H).astype(jnp.float32)
    b2 = b.reshape(1, H).astype(jnp.float32)
    # DMA the weight as bf16 on the MXU path: halves its HBM/VMEM footprint.
    # TODO(synk): for very large H (>= ~2k) on v7x (64 MiB VMEM), also tile W
    # over the output-N dimension with a second grid axis.
    w_in = w.astype(jnp.bfloat16) if use_bf16_matmul else w
    seed_arr = jnp.asarray([seed], dtype=jnp.int32)

    kernel = functools.partial(
        _sublayer_connection_kernel,
        dropout_p=float(dropout_p), eps=float(eps), training=bool(training),
        tm=tm, use_bf16_matmul=bool(use_bf16_matmul))

    out = pl.pallas_call(
        kernel,
        out_shape=jax.ShapeDtypeStruct((r_pad, H), x.dtype),
        grid_spec=pltpu.PrefetchScalarGridSpec(
            num_scalar_prefetch=1,
            grid=(r_pad // tm,),
            in_specs=[
                pl.BlockSpec((tm, H), lambda i, seed: (i, 0)),   # x rows
                pl.BlockSpec((1, H), lambda i, seed: (0, 0)),    # gamma
                pl.BlockSpec((1, H), lambda i, seed: (0, 0)),    # beta
                pl.BlockSpec((H, H), lambda i, seed: (0, 0)),    # W (resident)
                pl.BlockSpec((1, H), lambda i, seed: (0, 0)),    # bias
            ],
            out_specs=pl.BlockSpec((tm, H), lambda i, seed: (i, 0)),
        ),
        compiler_params=pltpu.CompilerParams(
            # Row tiles are fully independent (dropout mask is a pure function
            # of (seed, global row, col)), so let v7x shard across its 2 TCs.
            dimension_semantics=("parallel",),
            vmem_limit_bytes=48 * 1024 * 1024,
        ),
    )(seed_arr, x2, gamma2, beta2, w_in, b2)

    return out[:R].reshape(B, S, H)


if __name__ == "__main__":
    # Small shapes consistent with the module: size (hidden) = 128 so the
    # lane dimension is a full vreg; batch=2, seq=8.
    B, S, H = 2, 8, 128
    dropout_p = 0.1

    key = jax.random.PRNGKey(0)
    kx, kw = jax.random.split(key)

    x = jax.random.normal(kx, (B, S, H), dtype=jnp.float32)

    # nn.LayerNorm defaults: gamma=1, beta=0.  Example sublayer = Linear(H, H)
    # with small random W and zero bias.
    gamma = jnp.ones((H,), dtype=jnp.float32)
    beta = jnp.zeros((H,), dtype=jnp.float32)
    w = jax.random.normal(kw, (H, H), dtype=jnp.float32) / jnp.sqrt(jnp.float32(H))
    b = jnp.zeros((H,), dtype=jnp.float32)

    out = sublayer_connection(x, gamma, beta, w, b, seed=0,
                              dropout_p=dropout_p, training=True)
    jax.block_until_ready(out)

    assert out.shape == (B, S, H)
    assert out.dtype == x.dtype
    assert bool(jnp.all(jnp.isfinite(out)))

    # TODO(synk): the dropout mask is a deterministic counter-based hash, so it
    # is reproducible given the seed but not bit-identical to torch's RNG.
    print("KERNEL_OK")
</pallas_src>

<mosaic_0001>
module attributes {stable_mosaic.version = 11 : i64} {
  func.func @_sublayer_connection_kernel(%arg0: i32, %arg1: memref<1xi32, #tpu.memory_space<smem>>, %arg2: memref<16x128xf32, #tpu.memory_space<vmem>>, %arg3: memref<1x128xf32, #tpu.memory_space<vmem>>, %arg4: memref<1x128xf32, #tpu.memory_space<vmem>>, %arg5: memref<128x128xbf16, #tpu.memory_space<vmem>>, %arg6: memref<1x128xf32, #tpu.memory_space<vmem>>, %arg7: memref<16x128xf32, #tpu.memory_space<vmem>>) attributes {dimension_semantics = [#tpu.dimension_semantics<parallel>], iteration_bounds = array<i64: 1>, scalar_prefetch = 1 : i64, scratch_operands = 0 : i64, tpu.core_type = #tpu.core_type<tc>, window_params = [{transform_indices = @transform_0, window_bounds = array<i64: 16, 128>}, {pipeline_mode = #tpu.pipeline_mode<synchronous>, transform_indices = @transform_1, window_bounds = array<i64: 1, 128>}, {pipeline_mode = #tpu.pipeline_mode<synchronous>, transform_indices = @transform_2, window_bounds = array<i64: 1, 128>}, {pipeline_mode = #tpu.pipeline_mode<synchronous>, transform_indices = @transform_3, window_bounds = array<i64: 128, 128>}, {pipeline_mode = #tpu.pipeline_mode<synchronous>, transform_indices = @transform_4, window_bounds = array<i64: 1, 128>}, {transform_indices = @transform_5, window_bounds = array<i64: 16, 128>}]} {
    %c0 = arith.constant 0 : index
    %c0_0 = arith.constant 0 : index
    %0 = vector.load %arg2[%c0, %c0_0] : memref<16x128xf32, #tpu.memory_space<vmem>>, vector<16x128xf32>
    %cst = arith.constant dense<0.000000e+00> : vector<16xf32>
    %1 = vector.multi_reduction <add>, %0, %cst [1] : vector<16x128xf32> to vector<16xf32>
    %2 = vector.shape_cast %1 : vector<16xf32> to vector<16x1xf32>
    %3 = arith.mulf %0, %0 : vector<16x128xf32>
    %cst_1 = arith.constant dense<0.000000e+00> : vector<16xf32>
    %4 = vector.multi_reduction <add>, %3, %cst_1 [1] : vector<16x128xf32> to vector<16xf32>
    %5 = vector.shape_cast %4 : vector<16xf32> to vector<16x1xf32>
    %cst_2 = arith.constant 7.812500e-03 : f32
    %6 = vector.broadcast %cst_2 : f32 to vector<16x1xf32>
    %7 = arith.mulf %2, %6 : vector<16x1xf32>
    %cst_3 = arith.constant 7.812500e-03 : f32
    %8 = vector.broadcast %cst_3 : f32 to vector<16x1xf32>
    %9 = arith.mulf %5, %8 : vector<16x1xf32>
    %10 = arith.mulf %7, %7 : vector<16x1xf32>
    %11 = arith.subf %9, %10 : vector<16x1xf32>
    %cst_4 = arith.constant 0.000000e+00 : f32
    %12 = vector.broadcast %cst_4 : f32 to vector<16x1xf32>
    %13 = arith.maximumf %11, %12 : vector<16x1xf32>
    %14 = vector.broadcast %7 : vector<16x1xf32> to vector<16x128xf32>
    %15 = arith.subf %0, %14 : vector<16x128xf32>
    %cst_5 = arith.constant 9.99999974E-6 : f32
    %16 = vector.broadcast %cst_5 : f32 to vector<16x1xf32>
    %17 = arith.addf %13, %16 : vector<16x1xf32>
    %18 = math.rsqrt %17 : vector<16x1xf32>
    %19 = vector.broadcast %18 : vector<16x1xf32> to vector<16x128xf32>
    %20 = arith.mulf %15, %19 : vector<16x128xf32>
    %c0_6 = arith.constant 0 : index
    %c0_7 = arith.constant 0 : index
    %21 = vector.load %arg3[%c0_6, %c0_7] : memref<1x128xf32, #tpu.memory_space<vmem>>, vector<1x128xf32>
    %22 = vector.broadcast %21 : vector<1x128xf32> to vector<16x128xf32>
    %23 = arith.mulf %20, %22 : vector<16x128xf32>
    %c0_8 = arith.constant 0 : index
    %c0_9 = arith.constant 0 : index
    %24 = vector.load %arg4[%c0_8, %c0_9] : memref<1x128xf32, #tpu.memory_space<vmem>>, vector<1x128xf32>
    %25 = vector.broadcast %24 : vector<1x128xf32> to vector<16x128xf32>
    %26 = arith.addf %23, %25 : vector<16x128xf32>
    %27 = arith.truncf %26 : vector<16x128xf32> to vector<16x128xbf16>
    %c0_10 = arith.constant 0 : index
    %c0_11 = arith.constant 0 : index
    %28 = vector.load %arg5[%c0_10, %c0_11] : memref<128x128xbf16, #tpu.memory_space<vmem>>, vector<128x128xbf16>
    %cst_12 = arith.constant dense<0.000000e+00> : vector<16x128xf32>
    %29 = tpu.matmul %27, %28, %cst_12 {dimension_numbers = #tpu.dot_dimension_numbers<[1], [0], [0], [1], [0, 0, 1, 1], [], []>} : vector<16x128xbf16>, vector<128x128xbf16>, vector<16x128xf32> -> vector<16x128xf32>
    %c0_13 = arith.constant 0 : index
    %c0_14 = arith.constant 0 : index
    %30 = vector.load %arg6[%c0_13, %c0_14] : memref<1x128xf32, #tpu.memory_space<vmem>>, vector<1x128xf32>
    %31 = vector.broadcast %30 : vector<1x128xf32> to vector<16x128xf32>
    %32 = arith.addf %29, %31 : vector<16x128xf32>
    %c16_i32 = arith.constant 16 : i32
    %33 = arith.muli %arg0, %c16_i32 : i32
    %c0_15 = arith.constant 0 : index
    %34 = memref.load %arg1[%c0_15] : memref<1xi32, #tpu.memory_space<smem>>
    %35 = tpu.iota {dimensions = array<i32: 0>} : vector<16x128xi32>
    %36 = vector.broadcast %33 : i32 to vector<16x128xi32>
    %37 = arith.addi %35, %36 : vector<16x128xi32>
    %38 = tpu.iota {dimensions = array<i32: 1>} : vector<16x128xi32>
    %c-1640531535_i32 = arith.constant -1640531535 : i32
    %39 = vector.broadcast %c-1640531535_i32 : i32 to vector<16x128xi32>
    %40 = arith.muli %37, %39 : vector<16x128xi32>
    %c-2048144777_i32 = arith.constant -2048144777 : i32
    %41 = vector.broadcast %c-2048144777_i32 : i32 to vector<16x128xi32>
    %42 = arith.muli %38, %41 : vector<16x128xi32>
    %43 = arith.addi %40, %42 : vector<16x128xi32>
    %c-1028477379_i32 = arith.constant -1028477379 : i32
    %44 = arith.muli %34, %c-1028477379_i32 : i32
    %45 = vector.broadcast %44 : i32 to vector<16x128xi32>
    %46 = arith.addi %43, %45 : vector<16x128xi32>
    %c16_i32_16 = arith.constant 16 : i32
    %47 = vector.broadcast %c16_i32_16 : i32 to vector<16x128xi32>
    %48 = arith.shrui %46, %47 : vector<16x128xi32>
    %49 = arith.xori %46, %48 : vector<16x128xi32>
    %c2146121005_i32 = arith.constant 2146121005 : i32
    %50 = vector.broadcast %c2146121005_i32 : i32 to vector<16x128xi32>
    %51 = arith.muli %49, %50 : vector<16x128xi32>
    %c15_i32 = arith.constant 15 : i32
    %52 = vector.broadcast %c15_i32 : i32 to vector<16x128xi32>
    %53 = arith.shrui %51, %52 : vector<16x128xi32>
    %54 = arith.xori %51, %53 : vector<16x128xi32>
    %c-2073254261_i32 = arith.constant -2073254261 : i32
    %55 = vector.broadcast %c-2073254261_i32 : i32 to vector<16x128xi32>
    %56 = arith.muli %54, %55 : vector<16x128xi32>
    %c16_i32_17 = arith.constant 16 : i32
    %57 = vector.broadcast %c16_i32_17 : i32 to vector<16x128xi32>
    %58 = arith.shrui %56, %57 : vector<16x128xi32>
    %59 = arith.xori %56, %58 : vector<16x128xi32>
    %c429496730_i32 = arith.constant 429496730 : i32
    %60 = vector.broadcast %c429496730_i32 : i32 to vector<16x128xi32>
    %61 = arith.cmpi uge, %59, %60 : vector<16x128xi32>
    %cst_18 = arith.constant 1.11111116 : f32
    %62 = vector.broadcast %cst_18 : f32 to vector<16x128xf32>
    %63 = arith.mulf %32, %62 : vector<16x128xf32>
    %cst_19 = arith.constant 0.000000e+00 : f32
    %64 = vector.broadcast %cst_19 : f32 to vector<16x128xf32>
    %65 = arith.select %61, %63, %64 : vector<16x128xi1>, vector<16x128xf32>
    %66 = arith.addf %0, %65 : vector<16x128xf32>
    %c0_20 = arith.constant 0 : index
    %c0_21 = arith.constant 0 : index
    %67 = vector.load %arg7[%c0_20, %c0_21] : memref<16x128xf32, #tpu.memory_space<vmem>>, vector<16x128xf32>
    tpu.vector_store %arg7[%c0_20, %c0_21], %66 {strides = array<i32>} : memref<16x128xf32, #tpu.memory_space<vmem>>, vector<16x128xf32>,
    return
  }
  func.func @transform_0(%arg0: i32, %arg1: memref<1xi32, #tpu.memory_space<smem>>) -> (i32, i32) {
    %c0_i32 = arith.constant 0 : i32
    %c0_i32_0 = arith.constant 0 : i32
    return %arg0, %c0_i32 : i32, i32
  }
  func.func @transform_1(%arg0: i32, %arg1: memref<1xi32, #tpu.memory_space<smem>>) -> (i32, i32) {
    %c0_i32 = arith.constant 0 : i32
    %c0_i32_0 = arith.constant 0 : i32
    %c0_i32_1 = arith.constant 0 : i32
    return %c0_i32, %c0_i32_0 : i32, i32
  }
  func.func @transform_2(%arg0: i32, %arg1: memref<1xi32, #tpu.memory_space<smem>>) -> (i32, i32) {
    %c0_i32 = arith.constant 0 : i32
    %c0_i32_0 = arith.constant 0 : i32
    %c0_i32_1 = arith.constant 0 : i32
    return %c0_i32, %c0_i32_0 : i32, i32
  }
  func.func @transform_3(%arg0: i32, %arg1: memref<1xi32, #tpu.memory_space<smem>>) -> (i32, i32) {
    %c0_i32 = arith.constant 0 : i32
    %c0_i32_0 = arith.constant 0 : i32
    %c0_i32_1 = arith.constant 0 : i32
    return %c0_i32, %c0_i32_0 : i32, i32
  }
  func.func @transform_4(%arg0: i32, %arg1: memref<1xi32, #tpu.memory_space<smem>>) -> (i32, i32) {
    %c0_i32 = arith.constant 0 : i32
    %c0_i32_0 = arith.constant 0 : i32
    %c0_i32_1 = arith.constant 0 : i32
    return %c0_i32, %c0_i32_0 : i32, i32
  }
  func.func @transform_5(%arg0: i32, %arg1: memref<1xi32, #tpu.memory_space<smem>>) -> (i32, i32) {
    %c0_i32 = arith.constant 0 : i32
    %c0_i32_0 = arith.constant 0 : i32
    return %arg0, %c0_i32 : i32, i32
  }
}

</mosaic_0001>

<bundles_post_ra>
// kernel: tpu_custom_call.1
= control target key start
LH: loop header
LB: loop body
LE: loop exit
PB: predicated region body
PF: predicated region fallthrough
CT: control target
= control target key end

     0   :  { %12 = vsyncpa [#allocation5], 0  ;;  %s488_s0 = inlined_call_operand.<no memory space> [shape: s32[1], index: 0, kind: input, shape index: {}]   ;;  %s489_s1 = inlined_call_operand.hbm [shape: f32[16,128], index: 1, kind: input, shape index: {}]   ;;  %s490_s2 = inlined_call_operand.vmem [shape: f32[1,128], index: 2, kind: input, shape index: {}]   ;;  %s491_s3 = inlined_call_operand.vmem [shape: f32[1,128], index: 3, kind: input, shape index: {}]   ;;  %s492_s4 = inlined_call_operand.hbm [shape: bf16[128,128], index: 4, kind: input, shape index: {}]   ;;  %s493_s5 = inlined_call_operand.vmem [shape: f32[1,128], index: 5, kind: input, shape index: {}]   ;;  %s494_s6 = inlined_call_operand.hbm [shape: f32[16,128], index: 6, kind: output, shape index: {}]  }
   0x1   :  { %13 = vsyncpa [#allocation8], 0 }
   0x2   :  { %14 = vsyncpa [#allocation6], 0  ;;  %s403_s21 = smov [#allocation4]  }
   0x3   :  { %s20_s22 = sshll.u32 %s403_s21, 4  ;;  %s21_s22 = int_to_ptr.vmem [resolvable:$true] %s20_s22 }
   0x4   :  { %s345_s23 = scalar_lea.vmem %s21_s22, 256  ;;  %p350_p1 = scmp.lt.s32.totalorder %s21_s22, %s21_s22 }
   0x5   :  { %p346_p0 = scmp.ne.s32.totalorder %s21_s22, %s345_s23  ;;  %p351_p2 = scmp.lt.s32.totalorder %s345_s23, %s345_s23 }
   0x7   :  { %p352_p3 = por %p351_p2, %p350_p1 }
   0x9   :  { %p353_p4 = pnand %p352_p3, %p346_p0 }
   0xb   :  { %356 = shalt.err (!%p353_p4)
}
   0xc   :  { %s404_s24 = smov 128   ;;  %s405_s25 = smov 8  }
   0xd   :  { %26 = dma.hbm_to_vmem [thread:$0]  %s489_s1, 256, %s21_s22, [#allocation5], %s404_s24, %s404_s24, %s405_s25  }
   0xe   :  { %s406_s28 = smov [#allocation7]  }
   0xf   :  { %s36_s29 = sshll.u32 %s406_s28, 4  ;;  %s37_s29 = int_to_ptr.vmem [resolvable:$true] %s36_s29 }
  0x10   :  { %s365_s30 = scalar_lea.vmem %s37_s29, 1024  ;;  %p370_p6 = scmp.lt.s32.totalorder %s37_s29, %s37_s29 }
  0x11   :  { %p366_p5 = scmp.ne.s32.totalorder %s37_s29, %s365_s30  ;;  %p371_p7 = scmp.lt.s32.totalorder %s365_s30, %s365_s30 }
  0x13   :  { %p372_p8 = por %p371_p7, %p370_p6 }
  0x15   :  { %p373_p9 = pnand %p372_p8, %p366_p5 }
  0x17   :  { %376 = shalt.err (!%p373_p9)
}
  0x18   :  { %s407_s7 = smov 64   ;;  %s408_s8 = smov 4  }
  0x19   :  { %42 = dma.hbm_to_vmem [thread:$0]  %s492_s4, 1024, %s37_s29, [#allocation8], %s407_s7, %s407_s7, %s408_s8  }
  0x1a   :  { %397 = dma.done.wait [#allocation5], 256  }
  0x1b   :  { %398 = vsyncadd [#allocation5], 4294967040 }
  0x1c   :  { %399 = dma.done.wait [#allocation8], 1024  }
  0x1d   :  { %400 = vsyncadd [#allocation8], 4294966272  ;;  %v456_v0 = vld [vmem:[#allocation4] sm:$0xff]  ;;  %v458_v1 = vld [vmem:[#allocation4 + $0x8] sm:$0xff]  ;;  %v409_v5 = vmov 0.0   ;;  %vm410_vm0 = vmmov 0   ;;  %v215_v42 = vlaneseq }
  0x1e   :  { %54 = vadd.xlane.f32.xlu0 %v456_v0  ;;  %v58_v2 = vmul.f32 %v456_v0, %v456_v0  ;;  %v59_v3 = vmul.f32 %v458_v1, %v458_v1  ;;  %v325_v4 = vld [vmem:[#allocation7 + $0x38] sm:$0xff]   ;;  %296 = vmatprep.subr.bf16.mxu0 %v409_v5  ;;  %v326_v6 = vld [vmem:[#allocation7 + $0x30] sm:$0xff]   ;;  %v327_v7 = vld [vmem:[#allocation7 + $0x28] sm:$0xff]   ;;  %s228_s14 = smul.u32 3266489917, %s488_s0  ;;  %s411_s15 = smov [#allocation9]  }
  0x1f   :  { %297 = vmatpush3.bf16.msra.mxu0 %v325_v4  ;;  %v328_v8 = vld [vmem:[#allocation7 + $0x20] sm:$0xff]   ;;  %312 = vmatprep.mubr.msk.bf16.mxu0 %vm410_vm0, %v409_v5  ;;  %v329_v9 = vld [vmem:[#allocation7 + $0x18] sm:$0xff]   ;;  %v330_v10 = vld [vmem:[#allocation7 + $0x10] sm:$0xff]   ;;  %v216_v43 = vshrl.u32 %v215_v42, 7  ;;  %v222_v44 = vand.u32 127, %v215_v42  ;;  %s263_s16 = sshll.u32 %s411_s15, 4  ;;  %s264_s16 = int_to_ptr.vmem [resolvable:$true] %s263_s16 }
  0x20   :  { %60 = vadd.xlane.f32.xlu1 %v58_v2  ;;  %298 = vmatprep.subr.bf16.mxu0 %v409_v5  ;;  %v331_v11 = vld [vmem:[#allocation7 + $0x8] sm:$0xff]   ;;  %v332_v12 = vld [vmem:[#allocation7] sm:$0xff]   ;;  %v276_v32 = vld [vmem:[%s490_s2] ss:$0 sm:$0xff]  ;;  %v229_v50 = vstv %s228_s14  ;;  %p382_p11 = scmp.lt.s32.totalorder %s264_s16, %s264_s16 }
  0x21   :  { %v277_v37 = vld [vmem:[%s491_s3] ss:$0 sm:$0xff]  ;;  %v223_v45 = vmul.u32 2654435761, %v216_v43  ;;  %v225_v46 = vmul.u32 2246822519, %v222_v44 }
  0x22   :  { %56 = vadd.xlane.f32.xlu0 %v458_v1  ;;  %v217_v47 = vadd.s32 8, %v216_v43 }
  0x23   :  { %299 = vmatpush3.bf16.msra.mxu0 %v326_v6  ;;  %v226_v48 = vadd.s32 %v225_v46, %v223_v45 }
  0x24   :  { %62 = vadd.xlane.f32.xlu1 %v59_v3  ;;  %300 = vmatprep.subr.bf16.mxu0 %v409_v5  ;;  %v224_v49 = vmul.u32 2654435761, %v217_v47 }
  0x25   :  { %v230_v51 = vadd.s32 %v229_v50, %v226_v48 }
  0x26   :  { %v227_v52 = vadd.s32 %v225_v46, %v224_v49 }
  0x27   :  { %301 = vmatpush3.bf16.msra.mxu0 %v327_v7  ;;  %v232_v53 = vshrl.u32 %v230_v51, 16 }
  0x28   :  { %302 = vmatprep.subr.bf16.mxu0 %v409_v5  ;;  %v231_v54 = vadd.s32 %v229_v50, %v227_v52 }
  0x29   :  { %v234_v55 = vxor.u32 %v232_v53, %v230_v51 }
  0x2a   :  { %v233_v56 = vshrl.u32 %v231_v54, 16 }
  0x2b   :  { %303 = vmatpush3.bf16.msra.mxu0 %v328_v8  ;;  %v236_v57 = vmul.u32 2146121005, %v234_v55 }
  0x2c   :  { %304 = vmatprep.subr.bf16.mxu0 %v409_v5  ;;  %v235_v58 = vxor.u32 %v233_v56, %v231_v54 }
  0x2d   :  { %v238_v59 = vshrl.u32 %v236_v57, 15 }
  0x2e   :  { %v237_v60 = vmul.u32 2146121005, %v235_v58 }
  0x2f   :  { %305 = vmatpush3.bf16.msra.mxu0 %v329_v9  ;;  %v240_v61 = vxor.u32 %v238_v59, %v236_v57 }
  0x30   :  { %306 = vmatprep.subr.bf16.mxu0 %v409_v5  ;;  %v239_v62 = vshrl.u32 %v237_v60, 15 }
  0x31   :  { %v242_v63 = vmul.u32 2221713035, %v240_v61 }
  0x32   :  { %v241_v2 = vxor.u32 %v239_v62, %v237_v60 }
  0x33   :  { %307 = vmatpush3.bf16.msra.mxu0 %v330_v10  ;;  %v244_v3 = vshrl.u32 %v242_v63, 16 }
  0x34   :  { %308 = vmatprep.subr.bf16.mxu0 %v409_v5  ;;  %v243_v4 = vmul.u32 2221713035, %v241_v2 }
  0x35   :  { %v246_v6 = vxor.u32 %v244_v3, %v242_v63 }
  0x36   :  { %v245_v7 = vshrl.u32 %v243_v4, 16 }
  0x37   :  { %309 = vmatpush3.bf16.msra.mxu0 %v331_v11  ;;  %vm248_vm1 = vcmp.ge.u32.totalorder %v246_v6, 429496730 }
  0x38   :  { %310 = vmatprep.subr.bf16.mxu0 %v409_v5  ;;  %v278_v5 = vld [vmem:[%s493_s5] ss:$0 sm:$0xff]  ;;  %v247_v11 = vxor.u32 %v245_v7, %v243_v4  ;;  %s377_s5 = scalar_lea.vmem %s264_s16, 256 }
  0x39   :  { %p378_p10 = scmp.ne.s32.totalorder %s264_s16, %s377_s5  ;;  %p383_p12 = scmp.lt.s32.totalorder %s377_s5, %s377_s5 }
  0x3a   :  { %vm249_vm2 = vcmp.ge.u32.totalorder %v247_v11, 429496730 }
  0x3b   :  { %311 = vmatpush3.bf16.msra.mxu0 %v332_v12  ;;  %p384_p13 = por %p383_p12, %p382_p11 }
  0x3d   :  { %p385_p0 = pnand %p384_p13, %p378_p10 }
  0xa7   :  { %v55_v13 = vpop.xlane.xlu0 %54 }
  0xa8   :  { %v64_v14 = vmul.f32 0.0078125, %v55_v13 }
  0xa9   :  { %v61_v15 = vpop.xlane.xlu1 %60 }
  0xaa   :  { %v68_v16 = vmul.f32 %v64_v14, %v64_v14  ;;  %v66_v17 = vmul.f32 0.0078125, %v61_v15  ;;  %v74_v29 = vsub.f32 %v456_v0, %v64_v14 }
  0xab   :  { %v57_v18 = vpop.xlane.xlu0 %56 }
  0xac   :  { %v70_v19 = vsub.f32 %v66_v17, %v68_v16  ;;  %v65_v20 = vmul.f32 0.0078125, %v57_v18 }
  0xad   :  { %v63_v21 = vpop.xlane.xlu1 %62 }
  0xae   :  { %v72_v22 = vmax.f32 %v70_v19, 0.0  ;;  %v69_v23 = vmul.f32 %v65_v20, %v65_v20  ;;  %v67_v24 = vmul.f32 0.0078125, %v63_v21  ;;  %v75_v33 = vsub.f32 %v458_v1, %v65_v20 }
  0xb0   :  { %v76_v25 = vadd.f32 1e-05, %v72_v22  ;;  %v71_v26 = vsub.f32 %v67_v24, %v69_v23 }
  0xb2   :  { %333 = vrsqrt.f32 %v76_v25  ;;  %v73_v27 = vmax.f32 %v71_v26, 0.0 }
  0xb4   :  { %v77_v28 = vadd.f32 1e-05, %v73_v27 }
  0xb6   :  { %335 = vrsqrt.f32 %v77_v28 }
  0xbf   :  { %v334_v30 = vpop.eup %333 }
  0xc0   :  { %v80_v31 = vmul.f32 %v334_v30, %v74_v29 }
  0xc2   :  { %v89_v36 = vmul.f32 %v276_v32, %v80_v31 }
  0xc3   :  { %v336_v34 = vpop.eup %335 }
  0xc4   :  { %v81_v35 = vmul.f32 %v336_v34, %v75_v33  ;;  %v98_v39 = vadd.f32 %v277_v37, %v89_v36 }
  0xc6   :  { %v90_v38 = vmul.f32 %v276_v32, %v81_v35 }
  0xc8   :  { %v99_v40 = vadd.f32 %v277_v37, %v90_v38 }
  0xca   :  { %v100_v41 = vpack.c.bf16 %v99_v40, %v98_v39 }
  0xcc   :  { %313 = vmatmul.mubr.bf16.vlgmr.msra.gmra.mxu0 %v100_v41 }
 0x18c   :  { %v206_v8 = vpop.f32.mrf.mxu0 }
 0x18d   :  { %v207_v9 = vadd.f32 %v278_v5, %v206_v8 }
 0x18e   :  { %v314_v10 = vpop.f32.mrf.mxu0 }
 0x18f   :  { %v250_v12 = vmul.f32 1.1111112, %v207_v9 }
 0x190   :  { %v209_v13 = vpop.f32.mrf.mxu0 }
 0x191   :  { %v252_v14 = vsel %vm248_vm1, %v250_v12, 0.0  ;;  %v210_v15 = vadd.f32 %v278_v5, %v209_v13 }
 0x192   :  { %v254_v16 = vadd.f32 %v252_v14, %v456_v0  ;;  %v315_v17 = vpop.f32.mrf.mxu0 }
 0x193   :  { %v251_v18 = vmul.f32 1.1111112, %v210_v15 }
 0x194   :  { %256 = vst [vmem:[#allocation9] sm:$0xff] %v254_v16 }
 0x195   :  { %v253_v19 = vsel %vm249_vm2, %v251_v18, 0.0 }
 0x196   :  { %v255_v20 = vadd.f32 %v253_v19, %v458_v1 }
 0x198   :  { %257 = vst [vmem:[#allocation9 + $0x8] sm:$0xff] %v255_v20 }
 0x199   :  { %388 = shalt.err (!%p385_p0)
}
 0x19a   :  { %269 = dma.vmem_to_hbm [thread:$0]  %s264_s16, 256, %s494_s6, [#allocation6], %s404_s24, %s404_s24, %s405_s25  }
 0x19b   :  { %401 = dma.done.wait [#allocation6], 256  }
 0x19c   :  { %402 = vsyncadd [#allocation6], 4294967040 }
 0x19d   :  { %273 = vsyncpa [#allocation5], 1 }
 0x19e   :  { %274 = vsyncpa [#allocation8], 1 }
 0x19f   :  { %275 = vsyncpa [#allocation6], 1 }

</bundles_post_ra>
